<compile_context>
chip_gen: v5e
topology: v5e:2x2
jax: 0.10.0
libtpu: 0.0.40
codegen_flags: <defaults>
</compile_context>

<pallas_src>
import functools

import jax
import jax.numpy as jnp
import numpy as np
from jax import lax
from jax.experimental import pallas as pl
from jax.experimental.pallas import tpu as pltpu


# ---------------------------------------------------------------------------
# Pallas kernels
# ---------------------------------------------------------------------------

def _attention_heads_kernel(x_ref, wq_ref, wk_ref, wv_ref, er_ref, o_ref,
                            *, heads, d_model, compute_dtype):
    """One batch element: QKV projections + rel-pos causal attention, all heads fused.

    x_ref : (1, t, e)   this batch element's activations (e = d_model = heads * s)
    w*_ref: (h, s, s)   per-head Linear weights (PyTorch layout: out x in)
    er_ref: (s, t)      relative-position embedding (f32)
    o_ref : (1, e, t)   concatenated head outputs, already transposed
                        (equals `out.transpose(1, 2)` of the reference module)
    """
    f32 = jnp.float32
    cd = compute_dtype
    x = x_ref[0]                              # (t, e) in compute_dtype
    t = x.shape[0]
    s = d_model // heads

    scale = float(d_model) ** 0.25
    inv_scale = 1.0 / scale

    nt = (((1,), (1,)), ((), ()))             # contract last dims: a @ b.T (NT matmul)

    # Fold the rel-pos matmul into the score matmul:  q @ Er == (q/scale) @ (scale*Er).
    er_scaled = er_ref[...] * scale           # (s, t), f32 -- shared across heads

    row = lax.broadcasted_iota(jnp.int32, (t, t), 0)
    col = lax.broadcasted_iota(jnp.int32, (t, t), 1)
    causal = col > row                        # shared across heads

    # Static unrolled loop over heads: replaces the previous 16-step (batch, head) grid
    # with one fat program per batch element.
    for hd in range(heads):
        lo = hd * s
        xh = x[:, lo:lo + s]                                                  # (t, s)

        # q = xh @ Wq.T ; k.T = Wk @ xh.T ; v.T = Wv @ xh.T   -- all NT, no transposes
        q = lax.dot_general(xh, wq_ref[hd], nt, preferred_element_type=f32)   # (t, s)
        kT = lax.dot_general(wk_ref[hd], xh, nt, preferred_element_type=f32)  # (s, t)
        vT = lax.dot_general(wv_ref[hd], xh, nt, preferred_element_type=f32)  # (s, t)

        # scores = (q/sc) @ (k/sc).T + q @ Er  ==  (q/sc) @ (kT/sc + sc*Er)
        qs = (q * inv_scale).astype(cd)                                       # (t, s)
        b_mat = (kT * inv_scale + er_scaled).astype(cd)                       # (s, t)
        scores = jnp.dot(qs, b_mat, preferred_element_type=f32)               # (t, t)
        scores = jnp.where(causal, f32(-1e9), scores)                         # causal mask

        # softmax (f32); reciprocal goes to the EUP instead of a VPU divide
        m = jnp.max(scores, axis=-1, keepdims=True)
        p = jnp.exp(scores - m)
        p = p * pl.reciprocal(jnp.sum(p, axis=-1, keepdims=True), approx=True)
        # (attention-prob dropout == identity in eval mode)

        # head output already transposed: (p @ v).T = v.T @ p.T   (NT matmul)
        o_hT = lax.dot_general(vT.astype(cd), p.astype(cd), nt,
                               preferred_element_type=f32)                    # (s, t)
        o_ref[0, lo:lo + s, :] = o_hT.astype(o_ref.dtype)


def _recombine_kernel(x_ref, w_ref, b_ref, o_ref):
    """y = x @ W.T + b for one (t, e) row tile; lane-dense (full d_model) output."""
    nt = (((1,), (1,)), ((), ()))
    o_ref[0] = (lax.dot_general(x_ref[0], w_ref[...], nt,
                                preferred_element_type=jnp.float32)
                + b_ref[...])


# ---------------------------------------------------------------------------
# Wrappers
# ---------------------------------------------------------------------------

def attention_heads(xb, wq, wk, wv, er, *, heads, d_model, compute_dtype):
    """xb: (b, t, e) -> transposed concatenated head outputs (b, e, t)."""
    b, t, e = xb.shape
    s = e // heads
    kernel = functools.partial(_attention_heads_kernel, heads=heads,
                               d_model=d_model, compute_dtype=compute_dtype)
    return pl.pallas_call(
        kernel,
        out_shape=jax.ShapeDtypeStruct((b, e, t), compute_dtype),
        grid=(b,),
        in_specs=[
            pl.BlockSpec((1, t, e), lambda bi: (bi, 0, 0)),
            pl.BlockSpec((heads, s, s), lambda bi: (0, 0, 0)),
            pl.BlockSpec((heads, s, s), lambda bi: (0, 0, 0)),
            pl.BlockSpec((heads, s, s), lambda bi: (0, 0, 0)),
            pl.BlockSpec((s, t), lambda bi: (0, 0)),
        ],
        out_specs=pl.BlockSpec((1, e, t), lambda bi: (bi, 0, 0)),
        compiler_params=pltpu.CompilerParams(dimension_semantics=("parallel",)),
    )(xb, wq, wk, wv, er)


def recombine(x, w_rec, b_rec):
    """x: (b, t, e) -> x @ w_rec.T + b_rec, tiled over batch, (b, t, d_model) f32."""
    b, t, e = x.shape
    d_model = w_rec.shape[0]
    return pl.pallas_call(
        _recombine_kernel,
        out_shape=jax.ShapeDtypeStruct((b, t, d_model), jnp.float32),
        grid=(b,),
        in_specs=[
            pl.BlockSpec((1, t, e), lambda bi: (bi, 0, 0)),
            pl.BlockSpec((d_model, e), lambda bi: (0, 0)),
            pl.BlockSpec((1, d_model), lambda bi: (0, 0)),
        ],
        out_specs=pl.BlockSpec((1, t, d_model), lambda bi: (bi, 0, 0)),
        compiler_params=pltpu.CompilerParams(dimension_semantics=("parallel",)),
    )(x, w_rec, b_rec.reshape(1, d_model))


def multiheaded_attention_forward(x, params, compute_dtype=jnp.float32):
    """x: (seq, batch, d_model) -- the layout the PyTorch module expects."""
    t, b, e = x.shape
    h = params["heads"]

    # module's x.permute(1, 0, 2)
    xb = jnp.transpose(x, (1, 0, 2)).astype(compute_dtype)            # (b, t, e)

    heads_t = attention_heads(
        xb,
        params["wq"].astype(compute_dtype),
        params["wk"].astype(compute_dtype),
        params["wv"].astype(compute_dtype),
        params["er"].astype(jnp.float32),
        heads=h, d_model=e, compute_dtype=compute_dtype,
    )                                                                 # (b, e, t)

    # torch: out = cat(heads, dim=2); out = out.transpose(1,2).contiguous().view(b,t,e)
    # heads_t already IS out.transpose(1, 2); the .view is a free row-major reshape.
    out_scr = heads_t.reshape(b, t, e)

    return recombine(out_scr,
                     params["w_rec"].astype(compute_dtype),
                     params["b_rec"].astype(jnp.float32))             # (b, t, e) f32


# ---------------------------------------------------------------------------
# Pure-JAX reference (mirrors the PyTorch forward, eval-mode dropout)
# ---------------------------------------------------------------------------

def reference_forward(x, params):
    t, b, e = x.shape
    h = params["heads"]
    s = e // h
    xb = jnp.transpose(x, (1, 0, 2))
    xh = xb.reshape(b, t, h, s)
    outs = []
    for head in range(h):
        xhd = xh[:, :, head, :]
        q = xhd @ params["wq"][head].T
        k = xhd @ params["wk"][head].T
        v = xhd @ params["wv"][head].T
        qer = q @ params["er"]
        qs = q / e ** 0.25
        ks = k / e ** 0.25
        scores = jnp.einsum("bij,bkj->bik", qs, ks) + qer
        mask = jnp.triu(jnp.ones((t, t)), 1)
        scores = jnp.where(mask == 1, -1e9, scores)
        probs = jax.nn.softmax(scores, axis=-1)
        outs.append(probs @ v)
    out = jnp.concatenate(outs, axis=2)
    out2 = jnp.transpose(out, (0, 2, 1)).reshape(b, t, h * s)
    return out2 @ params["w_rec"].T + params["b_rec"]


# ---------------------------------------------------------------------------
# Main
# ---------------------------------------------------------------------------

if __name__ == "__main__":
    d_model = 32
    heads = 8
    seq_len = 8
    batch = 2
    s = d_model // heads

    key = jax.random.PRNGKey(0)
    k_x, k_wq, k_wk, k_wv, k_er, k_wr, k_br = jax.random.split(key, 7)

    x = jax.random.normal(k_x, (seq_len, batch, d_model), dtype=jnp.float32)

    params = {
        "heads": heads,
        "wq": jax.random.normal(k_wq, (heads, s, s), dtype=jnp.float32) * 0.1,
        "wk": jax.random.normal(k_wk, (heads, s, s), dtype=jnp.float32) * 0.1,
        "wv": jax.random.normal(k_wv, (heads, s, s), dtype=jnp.float32) * 0.1,
        "er": jax.random.normal(k_er, (s, seq_len), dtype=jnp.float32),
        "w_rec": jax.random.normal(k_wr, (d_model, heads * s), dtype=jnp.float32) * 0.1,
        "b_rec": jax.random.normal(k_br, (d_model,), dtype=jnp.float32) * 0.1,
    }

    ref = reference_forward(x, params)

    # f32 path (tolerance slightly looser than strict f32 because the softmax
    # normalization uses the EUP approximate reciprocal).
    out = jax.block_until_ready(multiheaded_attention_forward(x, params))
    np.testing.assert_allclose(np.asarray(out), np.asarray(ref), rtol=2e-3, atol=2e-3)

    # bf16-MXU path (v5e/v6e feedback): bf16 operands, f32 accumulation + f32 softmax.
    out_bf16 = jax.block_until_ready(
        multiheaded_attention_forward(x, params, compute_dtype=jnp.bfloat16))
    np.testing.assert_allclose(np.asarray(out_bf16), np.asarray(ref),
                               rtol=5e-2, atol=5e-2)

    print("KERNEL_OK")
</pallas_src>

<mosaic_0001>
module attributes {stable_mosaic.version = 11 : i64} {
  func.func @_attention_heads_kernel(%arg0: i32, %arg1: memref<1x8x32xf32, #tpu.memory_space<vmem>>, %arg2: memref<8x4x4xf32, #tpu.memory_space<vmem>>, %arg3: memref<8x4x4xf32, #tpu.memory_space<vmem>>, %arg4: memref<8x4x4xf32, #tpu.memory_space<vmem>>, %arg5: memref<4x8xf32, #tpu.memory_space<vmem>>, %arg6: memref<1x32x8xf32, #tpu.memory_space<vmem>>) attributes {dimension_semantics = [#tpu.dimension_semantics<parallel>], iteration_bounds = array<i64: 2>, scalar_prefetch = 0 : i64, scratch_operands = 0 : i64, tpu.core_type = #tpu.core_type<tc>, window_params = [{transform_indices = @transform_0, window_bounds = array<i64: 1, 8, 32>}, {pipeline_mode = #tpu.pipeline_mode<synchronous>, transform_indices = @transform_1, window_bounds = array<i64: 8, 4, 4>}, {pipeline_mode = #tpu.pipeline_mode<synchronous>, transform_indices = @transform_2, window_bounds = array<i64: 8, 4, 4>}, {pipeline_mode = #tpu.pipeline_mode<synchronous>, transform_indices = @transform_3, window_bounds = array<i64: 8, 4, 4>}, {pipeline_mode = #tpu.pipeline_mode<synchronous>, transform_indices = @transform_4, window_bounds = array<i64: 4, 8>}, {transform_indices = @transform_5, window_bounds = array<i64: 1, 32, 8>}]} {
    %c0 = arith.constant 0 : index
    %c0_0 = arith.constant 0 : index
    %c0_1 = arith.constant 0 : index
    %0 = vector.load %arg1[%c0, %c0_0, %c0_1] : memref<1x8x32xf32, #tpu.memory_space<vmem>>, vector<1x8x32xf32>
    %1 = vector.shape_cast %0 : vector<1x8x32xf32> to vector<8x32xf32>
    %c0_2 = arith.constant 0 : index
    %c0_3 = arith.constant 0 : index
    %2 = vector.load %arg5[%c0_2, %c0_3] : memref<4x8xf32, #tpu.memory_space<vmem>>, vector<4x8xf32>
    %cst = arith.constant 2.37841415 : f32
    %3 = vector.broadcast %cst : f32 to vector<4x8xf32>
    %4 = arith.mulf %2, %3 : vector<4x8xf32>
    %5 = tpu.iota {dimensions = array<i32: 0>} : vector<8x8xi32>
    %6 = tpu.iota {dimensions = array<i32: 1>} : vector<8x8xi32>
    %7 = arith.cmpi sgt, %6, %5 : vector<8x8xi32>
    %8 = vector.extract_strided_slice %1 {offsets = [0, 0], sizes = [8, 4], strides = [1, 1]} : vector<8x32xf32> to vector<8x4xf32>
    %c0_4 = arith.constant 0 : index
    %c0_5 = arith.constant 0 : index
    %c0_6 = arith.constant 0 : index
    %9 = vector.load %arg2[%c0_4, %c0_5, %c0_6] : memref<8x4x4xf32, #tpu.memory_space<vmem>>, vector<1x4x4xf32>
    %10 = vector.shape_cast %9 : vector<1x4x4xf32> to vector<4x4xf32>
    %cst_7 = arith.constant dense<0.000000e+00> : vector<8x4xf32>
    %11 = tpu.matmul %8, %10, %cst_7 {dimension_numbers = #tpu.dot_dimension_numbers<[1], [1], [0], [0], [0, 0, 1, 0], [], []>} : vector<8x4xf32>, vector<4x4xf32>, vector<8x4xf32> -> vector<8x4xf32>
    %c0_8 = arith.constant 0 : index
    %c0_9 = arith.constant 0 : index
    %c0_10 = arith.constant 0 : index
    %12 = vector.load %arg3[%c0_8, %c0_9, %c0_10] : memref<8x4x4xf32, #tpu.memory_space<vmem>>, vector<1x4x4xf32>
    %13 = vector.shape_cast %12 : vector<1x4x4xf32> to vector<4x4xf32>
    %cst_11 = arith.constant dense<0.000000e+00> : vector<4x8xf32>
    %14 = tpu.matmul %13, %8, %cst_11 {dimension_numbers = #tpu.dot_dimension_numbers<[1], [1], [0], [0], [0, 0, 1, 0], [], []>} : vector<4x4xf32>, vector<8x4xf32>, vector<4x8xf32> -> vector<4x8xf32>
    %c0_12 = arith.constant 0 : index
    %c0_13 = arith.constant 0 : index
    %c0_14 = arith.constant 0 : index
    %15 = vector.load %arg4[%c0_12, %c0_13, %c0_14] : memref<8x4x4xf32, #tpu.memory_space<vmem>>, vector<1x4x4xf32>
    %16 = vector.shape_cast %15 : vector<1x4x4xf32> to vector<4x4xf32>
    %cst_15 = arith.constant dense<0.000000e+00> : vector<4x8xf32>
    %17 = tpu.matmul %16, %8, %cst_15 {dimension_numbers = #tpu.dot_dimension_numbers<[1], [1], [0], [0], [0, 0, 1, 0], [], []>} : vector<4x4xf32>, vector<8x4xf32>, vector<4x8xf32> -> vector<4x8xf32>
    %cst_16 = arith.constant 0.420448214 : f32
    %18 = vector.broadcast %cst_16 : f32 to vector<8x4xf32>
    %19 = arith.mulf %11, %18 : vector<8x4xf32>
    %cst_17 = arith.constant 0.420448214 : f32
    %20 = vector.broadcast %cst_17 : f32 to vector<4x8xf32>
    %21 = arith.mulf %14, %20 : vector<4x8xf32>
    %22 = arith.addf %21, %4 : vector<4x8xf32>
    %cst_18 = arith.constant dense<0.000000e+00> : vector<8x8xf32>
    %23 = tpu.matmul %19, %22, %cst_18 {dimension_numbers = #tpu.dot_dimension_numbers<[1], [0], [0], [1], [0, 0, 1, 1], [], []>} : vector<8x4xf32>, vector<4x8xf32>, vector<8x8xf32> -> vector<8x8xf32>
    %cst_19 = arith.constant -1.000000e+09 : f32
    %24 = vector.broadcast %cst_19 : f32 to vector<8x8xf32>
    %25 = arith.select %7, %24, %23 : vector<8x8xi1>, vector<8x8xf32>
    %cst_20 = arith.constant dense<0xFF800000> : vector<8xf32>
    %26 = vector.multi_reduction <maximumf>, %25, %cst_20 [1] : vector<8x8xf32> to vector<8xf32>
    %27 = vector.shape_cast %26 : vector<8xf32> to vector<8x1xf32>
    %28 = vector.broadcast %27 : vector<8x1xf32> to vector<8x8xf32>
    %29 = arith.subf %25, %28 : vector<8x8xf32>
    %30 = math.exp %29 : vector<8x8xf32>
    %cst_21 = arith.constant dense<0.000000e+00> : vector<8xf32>
    %31 = vector.multi_reduction <add>, %30, %cst_21 [1] : vector<8x8xf32> to vector<8xf32>
    %32 = vector.shape_cast %31 : vector<8xf32> to vector<8x1xf32>
    %33 = tpu.reciprocal %32 {approx = true} : vector<8x1xf32> -> vector<8x1xf32>
    %34 = vector.broadcast %33 : vector<8x1xf32> to vector<8x8xf32>
    %35 = arith.mulf %30, %34 : vector<8x8xf32>
    %cst_22 = arith.constant dense<0.000000e+00> : vector<4x8xf32>
    %36 = tpu.matmul %17, %35, %cst_22 {dimension_numbers = #tpu.dot_dimension_numbers<[1], [1], [0], [0], [0, 0, 1, 0], [], []>} : vector<4x8xf32>, vector<8x8xf32>, vector<4x8xf32> -> vector<4x8xf32>
    %c0_23 = arith.constant 0 : index
    %c0_24 = arith.constant 0 : index
    %c0_25 = arith.constant 0 : index
    %37 = vector.load %arg6[%c0_23, %c0_24, %c0_25] : memref<1x32x8xf32, #tpu.memory_space<vmem>>, vector<1x4x8xf32>
    %38 = vector.shape_cast %37 : vector<1x4x8xf32> to vector<4x8xf32>
    %39 = vector.shape_cast %36 : vector<4x8xf32> to vector<1x4x8xf32>
    tpu.vector_store %arg6[%c0_23, %c0_24, %c0_25], %39 {strides = array<i32>} : memref<1x32x8xf32, #tpu.memory_space<vmem>>, vector<1x4x8xf32>,
    %40 = vector.extract_strided_slice %1 {offsets = [0, 4], sizes = [8, 4], strides = [1, 1]} : vector<8x32xf32> to vector<8x4xf32>
    %c1 = arith.constant 1 : index
    %c0_26 = arith.constant 0 : index
    %c0_27 = arith.constant 0 : index
    %41 = vector.load %arg2[%c1, %c0_26, %c0_27] : memref<8x4x4xf32, #tpu.memory_space<vmem>>, vector<1x4x4xf32>
    %42 = vector.shape_cast %41 : vector<1x4x4xf32> to vector<4x4xf32>
    %cst_28 = arith.constant dense<0.000000e+00> : vector<8x4xf32>
    %43 = tpu.matmul %40, %42, %cst_28 {dimension_numbers = #tpu.dot_dimension_numbers<[1], [1], [0], [0], [0, 0, 1, 0], [], []>} : vector<8x4xf32>, vector<4x4xf32>, vector<8x4xf32> -> vector<8x4xf32>
    %c1_29 = arith.constant 1 : index
    %c0_30 = arith.constant 0 : index
    %c0_31 = arith.constant 0 : index
    %44 = vector.load %arg3[%c1_29, %c0_30, %c0_31] : memref<8x4x4xf32, #tpu.memory_space<vmem>>, vector<1x4x4xf32>
    %45 = vector.shape_cast %44 : vector<1x4x4xf32> to vector<4x4xf32>
    %cst_32 = arith.constant dense<0.000000e+00> : vector<4x8xf32>
    %46 = tpu.matmul %45, %40, %cst_32 {dimension_numbers = #tpu.dot_dimension_numbers<[1], [1], [0], [0], [0, 0, 1, 0], [], []>} : vector<4x4xf32>, vector<8x4xf32>, vector<4x8xf32> -> vector<4x8xf32>
    %c1_33 = arith.constant 1 : index
    %c0_34 = arith.constant 0 : index
    %c0_35 = arith.constant 0 : index
    %47 = vector.load %arg4[%c1_33, %c0_34, %c0_35] : memref<8x4x4xf32, #tpu.memory_space<vmem>>, vector<1x4x4xf32>
    %48 = vector.shape_cast %47 : vector<1x4x4xf32> to vector<4x4xf32>
    %cst_36 = arith.constant dense<0.000000e+00> : vector<4x8xf32>
    %49 = tpu.matmul %48, %40, %cst_36 {dimension_numbers = #tpu.dot_dimension_numbers<[1], [1], [0], [0], [0, 0, 1, 0], [], []>} : vector<4x4xf32>, vector<8x4xf32>, vector<4x8xf32> -> vector<4x8xf32>
    %cst_37 = arith.constant 0.420448214 : f32
    %50 = vector.broadcast %cst_37 : f32 to vector<8x4xf32>
    %51 = arith.mulf %43, %50 : vector<8x4xf32>
    %cst_38 = arith.constant 0.420448214 : f32
    %52 = vector.broadcast %cst_38 : f32 to vector<4x8xf32>
    %53 = arith.mulf %46, %52 : vector<4x8xf32>
    %54 = arith.addf %53, %4 : vector<4x8xf32>
    %cst_39 = arith.constant dense<0.000000e+00> : vector<8x8xf32>
    %55 = tpu.matmul %51, %54, %cst_39 {dimension_numbers = #tpu.dot_dimension_numbers<[1], [0], [0], [1], [0, 0, 1, 1], [], []>} : vector<8x4xf32>, vector<4x8xf32>, vector<8x8xf32> -> vector<8x8xf32>
    %cst_40 = arith.constant -1.000000e+09 : f32
    %56 = vector.broadcast %cst_40 : f32 to vector<8x8xf32>
    %57 = arith.select %7, %56, %55 : vector<8x8xi1>, vector<8x8xf32>
    %cst_41 = arith.constant dense<0xFF800000> : vector<8xf32>
    %58 = vector.multi_reduction <maximumf>, %57, %cst_41 [1] : vector<8x8xf32> to vector<8xf32>
    %59 = vector.shape_cast %58 : vector<8xf32> to vector<8x1xf32>
    %60 = vector.broadcast %59 : vector<8x1xf32> to vector<8x8xf32>
    %61 = arith.subf %57, %60 : vector<8x8xf32>
    %62 = math.exp %61 : vector<8x8xf32>
    %cst_42 = arith.constant dense<0.000000e+00> : vector<8xf32>
    %63 = vector.multi_reduction <add>, %62, %cst_42 [1] : vector<8x8xf32> to vector<8xf32>
    %64 = vector.shape_cast %63 : vector<8xf32> to vector<8x1xf32>
    %65 = tpu.reciprocal %64 {approx = true} : vector<8x1xf32> -> vector<8x1xf32>
    %66 = vector.broadcast %65 : vector<8x1xf32> to vector<8x8xf32>
    %67 = arith.mulf %62, %66 : vector<8x8xf32>
    %cst_43 = arith.constant dense<0.000000e+00> : vector<4x8xf32>
    %68 = tpu.matmul %49, %67, %cst_43 {dimension_numbers = #tpu.dot_dimension_numbers<[1], [1], [0], [0], [0, 0, 1, 0], [], []>} : vector<4x8xf32>, vector<8x8xf32>, vector<4x8xf32> -> vector<4x8xf32>
    %c0_44 = arith.constant 0 : index
    %c4 = arith.constant 4 : index
    %c0_45 = arith.constant 0 : index
    %69 = vector.load %arg6[%c0_44, %c4, %c0_45] : memref<1x32x8xf32, #tpu.memory_space<vmem>>, vector<1x4x8xf32>
    %70 = vector.shape_cast %69 : vector<1x4x8xf32> to vector<4x8xf32>
    %71 = vector.shape_cast %68 : vector<4x8xf32> to vector<1x4x8xf32>
    tpu.vector_store %arg6[%c0_44, %c4, %c0_45], %71 {strides = array<i32>} : memref<1x32x8xf32, #tpu.memory_space<vmem>>, vector<1x4x8xf32>,
    %72 = vector.extract_strided_slice %1 {offsets = [0, 8], sizes = [8, 4], strides = [1, 1]} : vector<8x32xf32> to vector<8x4xf32>
    %c2 = arith.constant 2 : index
    %c0_46 = arith.constant 0 : index
    %c0_47 = arith.constant 0 : index
    %73 = vector.load %arg2[%c2, %c0_46, %c0_47] : memref<8x4x4xf32, #tpu.memory_space<vmem>>, vector<1x4x4xf32>
    %74 = vector.shape_cast %73 : vector<1x4x4xf32> to vector<4x4xf32>
    %cst_48 = arith.constant dense<0.000000e+00> : vector<8x4xf32>
    %75 = tpu.matmul %72, %74, %cst_48 {dimension_numbers = #tpu.dot_dimension_numbers<[1], [1], [0], [0], [0, 0, 1, 0], [], []>} : vector<8x4xf32>, vector<4x4xf32>, vector<8x4xf32> -> vector<8x4xf32>
    %c2_49 = arith.constant 2 : index
    %c0_50 = arith.constant 0 : index
    %c0_51 = arith.constant 0 : index
    %76 = vector.load %arg3[%c2_49, %c0_50, %c0_51] : memref<8x4x4xf32, #tpu.memory_space<vmem>>, vector<1x4x4xf32>
    %77 = vector.shape_cast %76 : vector<1x4x4xf32> to vector<4x4xf32>
    %cst_52 = arith.constant dense<0.000000e+00> : vector<4x8xf32>
    %78 = tpu.matmul %77, %72, %cst_52 {dimension_numbers = #tpu.dot_dimension_numbers<[1], [1], [0], [0], [0, 0, 1, 0], [], []>} : vector<4x4xf32>, vector<8x4xf32>, vector<4x8xf32> -> vector<4x8xf32>
    %c2_53 = arith.constant 2 : index
    %c0_54 = arith.constant 0 : index
    %c0_55 = arith.constant 0 : index
    %79 = vector.load %arg4[%c2_53, %c0_54, %c0_55] : memref<8x4x4xf32, #tpu.memory_space<vmem>>, vector<1x4x4xf32>
    %80 = vector.shape_cast %79 : vector<1x4x4xf32> to vector<4x4xf32>
    %cst_56 = arith.constant dense<0.000000e+00> : vector<4x8xf32>
    %81 = tpu.matmul %80, %72, %cst_56 {dimension_numbers = #tpu.dot_dimension_numbers<[1], [1], [0], [0], [0, 0, 1, 0], [], []>} : vector<4x4xf32>, vector<8x4xf32>, vector<4x8xf32> -> vector<4x8xf32>
    %cst_57 = arith.constant 0.420448214 : f32
    %82 = vector.broadcast %cst_57 : f32 to vector<8x4xf32>
    %83 = arith.mulf %75, %82 : vector<8x4xf32>
    %cst_58 = arith.constant 0.420448214 : f32
    %84 = vector.broadcast %cst_58 : f32 to vector<4x8xf32>
    %85 = arith.mulf %78, %84 : vector<4x8xf32>
    %86 = arith.addf %85, %4 : vector<4x8xf32>
    %cst_59 = arith.constant dense<0.000000e+00> : vector<8x8xf32>
    %87 = tpu.matmul %83, %86, %cst_59 {dimension_numbers = #tpu.dot_dimension_numbers<[1], [0], [0], [1], [0, 0, 1, 1], [], []>} : vector<8x4xf32>, vector<4x8xf32>, vector<8x8xf32> -> vector<8x8xf32>
    %cst_60 = arith.constant -1.000000e+09 : f32
    %88 = vector.broadcast %cst_60 : f32 to vector<8x8xf32>
    %89 = arith.select %7, %88, %87 : vector<8x8xi1>, vector<8x8xf32>
    %cst_61 = arith.constant dense<0xFF800000> : vector<8xf32>
    %90 = vector.multi_reduction <maximumf>, %89, %cst_61 [1] : vector<8x8xf32> to vector<8xf32>
    %91 = vector.shape_cast %90 : vector<8xf32> to vector<8x1xf32>
    %92 = vector.broadcast %91 : vector<8x1xf32> to vector<8x8xf32>
    %93 = arith.subf %89, %92 : vector<8x8xf32>
    %94 = math.exp %93 : vector<8x8xf32>
    %cst_62 = arith.constant dense<0.000000e+00> : vector<8xf32>
    %95 = vector.multi_reduction <add>, %94, %cst_62 [1] : vector<8x8xf32> to vector<8xf32>
    %96 = vector.shape_cast %95 : vector<8xf32> to vector<8x1xf32>
    %97 = tpu.reciprocal %96 {approx = true} : vector<8x1xf32> -> vector<8x1xf32>
    %98 = vector.broadcast %97 : vector<8x1xf32> to vector<8x8xf32>
    %99 = arith.mulf %94, %98 : vector<8x8xf32>
    %cst_63 = arith.constant dense<0.000000e+00> : vector<4x8xf32>
    %100 = tpu.matmul %81, %99, %cst_63 {dimension_numbers = #tpu.dot_dimension_numbers<[1], [1], [0], [0], [0, 0, 1, 0], [], []>} : vector<4x8xf32>, vector<8x8xf32>, vector<4x8xf32> -> vector<4x8xf32>
    %c0_64 = arith.constant 0 : index
    %c8 = arith.constant 8 : index
    %c0_65 = arith.constant 0 : index
    %101 = vector.load %arg6[%c0_64, %c8, %c0_65] : memref<1x32x8xf32, #tpu.memory_space<vmem>>, vector<1x4x8xf32>
    %102 = vector.shape_cast %101 : vector<1x4x8xf32> to vector<4x8xf32>
    %103 = vector.shape_cast %100 : vector<4x8xf32> to vector<1x4x8xf32>
    tpu.vector_store %arg6[%c0_64, %c8, %c0_65], %103 {strides = array<i32>} : memref<1x32x8xf32, #tpu.memory_space<vmem>>, vector<1x4x8xf32>,
    %104 = vector.extract_strided_slice %1 {offsets = [0, 12], sizes = [8, 4], strides = [1, 1]} : vector<8x32xf32> to vector<8x4xf32>
    %c3 = arith.constant 3 : index
    %c0_66 = arith.constant 0 : index
    %c0_67 = arith.constant 0 : index
    %105 = vector.load %arg2[%c3, %c0_66, %c0_67] : memref<8x4x4xf32, #tpu.memory_space<vmem>>, vector<1x4x4xf32>
    %106 = vector.shape_cast %105 : vector<1x4x4xf32> to vector<4x4xf32>
    %cst_68 = arith.constant dense<0.000000e+00> : vector<8x4xf32>
    %107 = tpu.matmul %104, %106, %cst_68 {dimension_numbers = #tpu.dot_dimension_numbers<[1], [1], [0], [0], [0, 0, 1, 0], [], []>} : vector<8x4xf32>, vector<4x4xf32>, vector<8x4xf32> -> vector<8x4xf32>
    %c3_69 = arith.constant 3 : index
    %c0_70 = arith.constant 0 : index
    %c0_71 = arith.constant 0 : index
    %108 = vector.load %arg3[%c3_69, %c0_70, %c0_71] : memref<8x4x4xf32, #tpu.memory_space<vmem>>, vector<1x4x4xf32>
    %109 = vector.shape_cast %108 : vector<1x4x4xf32> to vector<4x4xf32>
    %cst_72 = arith.constant dense<0.000000e+00> : vector<4x8xf32>
    %110 = tpu.matmul %109, %104, %cst_72 {dimension_numbers = #tpu.dot_dimension_numbers<[1], [1], [0], [0], [0, 0, 1, 0], [], []>} : vector<4x4xf32>, vector<8x4xf32>, vector<4x8xf32> -> vector<4x8xf32>
    %c3_73 = arith.constant 3 : index
    %c0_74 = arith.constant 0 : index
    %c0_75 = arith.constant 0 : index
    %111 = vector.load %arg4[%c3_73, %c0_74, %c0_75] : memref<8x4x4xf32, #tpu.memory_space<vmem>>, vector<1x4x4xf32>
    %112 = vector.shape_cast %111 : vector<1x4x4xf32> to vector<4x4xf32>
    %cst_76 = arith.constant dense<0.000000e+00> : vector<4x8xf32>
    %113 = tpu.matmul %112, %104, %cst_76 {dimension_numbers = #tpu.dot_dimension_numbers<[1], [1], [0], [0], [0, 0, 1, 0], [], []>} : vector<4x4xf32>, vector<8x4xf32>, vector<4x8xf32> -> vector<4x8xf32>
    %cst_77 = arith.constant 0.420448214 : f32
    %114 = vector.broadcast %cst_77 : f32 to vector<8x4xf32>
    %115 = arith.mulf %107, %114 : vector<8x4xf32>
    %cst_78 = arith.constant 0.420448214 : f32
    %116 = vector.broadcast %cst_78 : f32 to vector<4x8xf32>
    %117 = arith.mulf %110, %116 : vector<4x8xf32>
    %118 = arith.addf %117, %4 : vector<4x8xf32>
    %cst_79 = arith.constant dense<0.000000e+00> : vector<8x8xf32>
    %119 = tpu.matmul %115, %118, %cst_79 {dimension_numbers = #tpu.dot_dimension_numbers<[1], [0], [0], [1], [0, 0, 1, 1], [], []>} : vector<8x4xf32>, vector<4x8xf32>, vector<8x8xf32> -> vector<8x8xf32>
    %cst_80 = arith.constant -1.000000e+09 : f32
    %120 = vector.broadcast %cst_80 : f32 to vector<8x8xf32>
    %121 = arith.select %7, %120, %119 : vector<8x8xi1>, vector<8x8xf32>
    %cst_81 = arith.constant dense<0xFF800000> : vector<8xf32>
    %122 = vector.multi_reduction <maximumf>, %121, %cst_81 [1] : vector<8x8xf32> to vector<8xf32>
    %123 = vector.shape_cast %122 : vector<8xf32> to vector<8x1xf32>
    %124 = vector.broadcast %123 : vector<8x1xf32> to vector<8x8xf32>
    %125 = arith.subf %121, %124 : vector<8x8xf32>
    %126 = math.exp %125 : vector<8x8xf32>
    %cst_82 = arith.constant dense<0.000000e+00> : vector<8xf32>
    %127 = vector.multi_reduction <add>, %126, %cst_82 [1] : vector<8x8xf32> to vector<8xf32>
    %128 = vector.shape_cast %127 : vector<8xf32> to vector<8x1xf32>
    %129 = tpu.reciprocal %128 {approx = true} : vector<8x1xf32> -> vector<8x1xf32>
    %130 = vector.broadcast %129 : vector<8x1xf32> to vector<8x8xf32>
    %131 = arith.mulf %126, %130 : vector<8x8xf32>
    %cst_83 = arith.constant dense<0.000000e+00> : vector<4x8xf32>
    %132 = tpu.matmul %113, %131, %cst_83 {dimension_numbers = #tpu.dot_dimension_numbers<[1], [1], [0], [0], [0, 0, 1, 0], [], []>} : vector<4x8xf32>, vector<8x8xf32>, vector<4x8xf32> -> vector<4x8xf32>
    %c0_84 = arith.constant 0 : index
    %c12 = arith.constant 12 : index
    %c0_85 = arith.constant 0 : index
    %133 = vector.load %arg6[%c0_84, %c12, %c0_85] : memref<1x32x8xf32, #tpu.memory_space<vmem>>, vector<1x4x8xf32>
    %134 = vector.shape_cast %133 : vector<1x4x8xf32> to vector<4x8xf32>
    %135 = vector.shape_cast %132 : vector<4x8xf32> to vector<1x4x8xf32>
    tpu.vector_store %arg6[%c0_84, %c12, %c0_85], %135 {strides = array<i32>} : memref<1x32x8xf32, #tpu.memory_space<vmem>>, vector<1x4x8xf32>,
    %136 = vector.extract_strided_slice %1 {offsets = [0, 16], sizes = [8, 4], strides = [1, 1]} : vector<8x32xf32> to vector<8x4xf32>
    %c4_86 = arith.constant 4 : index
    %c0_87 = arith.constant 0 : index
    %c0_88 = arith.constant 0 : index
    %137 = vector.load %arg2[%c4_86, %c0_87, %c0_88] : memref<8x4x4xf32, #tpu.memory_space<vmem>>, vector<1x4x4xf32>
    %138 = vector.shape_cast %137 : vector<1x4x4xf32> to vector<4x4xf32>
    %cst_89 = arith.constant dense<0.000000e+00> : vector<8x4xf32>
    %139 = tpu.matmul %136, %138, %cst_89 {dimension_numbers = #tpu.dot_dimension_numbers<[1], [1], [0], [0], [0, 0, 1, 0], [], []>} : vector<8x4xf32>, vector<4x4xf32>, vector<8x4xf32> -> vector<8x4xf32>
    %c4_90 = arith.constant 4 : index
    %c0_91 = arith.constant 0 : index
    %c0_92 = arith.constant 0 : index
    %140 = vector.load %arg3[%c4_90, %c0_91, %c0_92] : memref<8x4x4xf32, #tpu.memory_space<vmem>>, vector<1x4x4xf32>
    %141 = vector.shape_cast %140 : vector<1x4x4xf32> to vector<4x4xf32>
    %cst_93 = arith.constant dense<0.000000e+00> : vector<4x8xf32>
    %142 = tpu.matmul %141, %136, %cst_93 {dimension_numbers = #tpu.dot_dimension_numbers<[1], [1], [0], [0], [0, 0, 1, 0], [], []>} : vector<4x4xf32>, vector<8x4xf32>, vector<4x8xf32> -> vector<4x8xf32>
    %c4_94 = arith.constant 4 : index
    %c0_95 = arith.constant 0 : index
    %c0_96 = arith.constant 0 : index
    %143 = vector.load %arg4[%c4_94, %c0_95, %c0_96] : memref<8x4x4xf32, #tpu.memory_space<vmem>>, vector<1x4x4xf32>
    %144 = vector.shape_cast %143 : vector<1x4x4xf32> to vector<4x4xf32>
    %cst_97 = arith.constant dense<0.000000e+00> : vector<4x8xf32>
    %145 = tpu.matmul %144, %136, %cst_97 {dimension_numbers = #tpu.dot_dimension_numbers<[1], [1], [0], [0], [0, 0, 1, 0], [], []>} : vector<4x4xf32>, vector<8x4xf32>, vector<4x8xf32> -> vector<4x8xf32>
    %cst_98 = arith.constant 0.420448214 : f32
    %146 = vector.broadcast %cst_98 : f32 to vector<8x4xf32>
    %147 = arith.mulf %139, %146 : vector<8x4xf32>
    %cst_99 = arith.constant 0.420448214 : f32
    %148 = vector.broadcast %cst_99 : f32 to vector<4x8xf32>
    %149 = arith.mulf %142, %148 : vector<4x8xf32>
    %150 = arith.addf %149, %4 : vector<4x8xf32>
    %cst_100 = arith.constant dense<0.000000e+00> : vector<8x8xf32>
    %151 = tpu.matmul %147, %150, %cst_100 {dimension_numbers = #tpu.dot_dimension_numbers<[1], [0], [0], [1], [0, 0, 1, 1], [], []>} : vector<8x4xf32>, vector<4x8xf32>, vector<8x8xf32> -> vector<8x8xf32>
    %cst_101 = arith.constant -1.000000e+09 : f32
    %152 = vector.broadcast %cst_101 : f32 to vector<8x8xf32>
    %153 = arith.select %7, %152, %151 : vector<8x8xi1>, vector<8x8xf32>
    %cst_102 = arith.constant dense<0xFF800000> : vector<8xf32>
    %154 = vector.multi_reduction <maximumf>, %153, %cst_102 [1] : vector<8x8xf32> to vector<8xf32>
    %155 = vector.shape_cast %154 : vector<8xf32> to vector<8x1xf32>
    %156 = vector.broadcast %155 : vector<8x1xf32> to vector<8x8xf32>
    %157 = arith.subf %153, %156 : vector<8x8xf32>
    %158 = math.exp %157 : vector<8x8xf32>
    %cst_103 = arith.constant dense<0.000000e+00> : vector<8xf32>
    %159 = vector.multi_reduction <add>, %158, %cst_103 [1] : vector<8x8xf32> to vector<8xf32>
    %160 = vector.shape_cast %159 : vector<8xf32> to vector<8x1xf32>
    %161 = tpu.reciprocal %160 {approx = true} : vector<8x1xf32> -> vector<8x1xf32>
    %162 = vector.broadcast %161 : vector<8x1xf32> to vector<8x8xf32>
    %163 = arith.mulf %158, %162 : vector<8x8xf32>
    %cst_104 = arith.constant dense<0.000000e+00> : vector<4x8xf32>
    %164 = tpu.matmul %145, %163, %cst_104 {dimension_numbers = #tpu.dot_dimension_numbers<[1], [1], [0], [0], [0, 0, 1, 0], [], []>} : vector<4x8xf32>, vector<8x8xf32>, vector<4x8xf32> -> vector<4x8xf32>
    %c0_105 = arith.constant 0 : index
    %c16 = arith.constant 16 : index
    %c0_106 = arith.constant 0 : index
    %165 = vector.load %arg6[%c0_105, %c16, %c0_106] : memref<1x32x8xf32, #tpu.memory_space<vmem>>, vector<1x4x8xf32>
    %166 = vector.shape_cast %165 : vector<1x4x8xf32> to vector<4x8xf32>
    %167 = vector.shape_cast %164 : vector<4x8xf32> to vector<1x4x8xf32>
    tpu.vector_store %arg6[%c0_105, %c16, %c0_106], %167 {strides = array<i32>} : memref<1x32x8xf32, #tpu.memory_space<vmem>>, vector<1x4x8xf32>,
    %168 = vector.extract_strided_slice %1 {offsets = [0, 20], sizes = [8, 4], strides = [1, 1]} : vector<8x32xf32> to vector<8x4xf32>
    %c5 = arith.constant 5 : index
    %c0_107 = arith.constant 0 : index
    %c0_108 = arith.constant 0 : index
    %169 = vector.load %arg2[%c5, %c0_107, %c0_108] : memref<8x4x4xf32, #tpu.memory_space<vmem>>, vector<1x4x4xf32>
    %170 = vector.shape_cast %169 : vector<1x4x4xf32> to vector<4x4xf32>
    %cst_109 = arith.constant dense<0.000000e+00> : vector<8x4xf32>
    %171 = tpu.matmul %168, %170, %cst_109 {dimension_numbers = #tpu.dot_dimension_numbers<[1], [1], [0], [0], [0, 0, 1, 0], [], []>} : vector<8x4xf32>, vector<4x4xf32>, vector<8x4xf32> -> vector<8x4xf32>
    %c5_110 = arith.constant 5 : index
    %c0_111 = arith.constant 0 : index
    %c0_112 = arith.constant 0 : index
    %172 = vector.load %arg3[%c5_110, %c0_111, %c0_112] : memref<8x4x4xf32, #tpu.memory_space<vmem>>, vector<1x4x4xf32>
    %173 = vector.shape_cast %172 : vector<1x4x4xf32> to vector<4x4xf32>
    %cst_113 = arith.constant dense<0.000000e+00> : vector<4x8xf32>
    %174 = tpu.matmul %173, %168, %cst_113 {dimension_numbers = #tpu.dot_dimension_numbers<[1], [1], [0], [0], [0, 0, 1, 0], [], []>} : vector<4x4xf32>, vector<8x4xf32>, vector<4x8xf32> -> vector<4x8xf32>
    %c5_114 = arith.constant 5 : index
    %c0_115 = arith.constant 0 : index
    %c0_116 = arith.constant 0 : index
    %175 = vector.load %arg4[%c5_114, %c0_115, %c0_116] : memref<8x4x4xf32, #tpu.memory_space<vmem>>, vector<1x4x4xf32>
    %176 = vector.shape_cast %175 : vector<1x4x4xf32> to vector<4x4xf32>
    %cst_117 = arith.constant dense<0.000000e+00> : vector<4x8xf32>
    %177 = tpu.matmul %176, %168, %cst_117 {dimension_numbers = #tpu.dot_dimension_numbers<[1], [1], [0], [0], [0, 0, 1, 0], [], []>} : vector<4x4xf32>, vector<8x4xf32>, vector<4x8xf32> -> vector<4x8xf32>
    %cst_118 = arith.constant 0.420448214 : f32
    %178 = vector.broadcast %cst_118 : f32 to vector<8x4xf32>
    %179 = arith.mulf %171, %178 : vector<8x4xf32>
    %cst_119 = arith.constant 0.420448214 : f32
    %180 = vector.broadcast %cst_119 : f32 to vector<4x8xf32>
    %181 = arith.mulf %174, %180 : vector<4x8xf32>
    %182 = arith.addf %181, %4 : vector<4x8xf32>
    %cst_120 = arith.constant dense<0.000000e+00> : vector<8x8xf32>
    %183 = tpu.matmul %179, %182, %cst_120 {dimension_numbers = #tpu.dot_dimension_numbers<[1], [0], [0], [1], [0, 0, 1, 1], [], []>} : vector<8x4xf32>, vector<4x8xf32>, vector<8x8xf32> -> vector<8x8xf32>
    %cst_121 = arith.constant -1.000000e+09 : f32
    %184 = vector.broadcast %cst_121 : f32 to vector<8x8xf32>
    %185 = arith.select %7, %184, %183 : vector<8x8xi1>, vector<8x8xf32>
    %cst_122 = arith.constant dense<0xFF800000> : vector<8xf32>
    %186 = vector.multi_reduction <maximumf>, %185, %cst_122 [1] : vector<8x8xf32> to vector<8xf32>
    %187 = vector.shape_cast %186 : vector<8xf32> to vector<8x1xf32>
    %188 = vector.broadcast %187 : vector<8x1xf32> to vector<8x8xf32>
    %189 = arith.subf %185, %188 : vector<8x8xf32>
    %190 = math.exp %189 : vector<8x8xf32>
    %cst_123 = arith.constant dense<0.000000e+00> : vector<8xf32>
    %191 = vector.multi_reduction <add>, %190, %cst_123 [1] : vector<8x8xf32> to vector<8xf32>
    %192 = vector.shape_cast %191 : vector<8xf32> to vector<8x1xf32>
    %193 = tpu.reciprocal %192 {approx = true} : vector<8x1xf32> -> vector<8x1xf32>
    %194 = vector.broadcast %193 : vector<8x1xf32> to vector<8x8xf32>
    %195 = arith.mulf %190, %194 : vector<8x8xf32>
    %cst_124 = arith.constant dense<0.000000e+00> : vector<4x8xf32>
    %196 = tpu.matmul %177, %195, %cst_124 {dimension_numbers = #tpu.dot_dimension_numbers<[1], [1], [0], [0], [0, 0, 1, 0], [], []>} : vector<4x8xf32>, vector<8x8xf32>, vector<4x8xf32> -> vector<4x8xf32>
    %c0_125 = arith.constant 0 : index
    %c20 = arith.constant 20 : index
    %c0_126 = arith.constant 0 : index
    %197 = vector.load %arg6[%c0_125, %c20, %c0_126] : memref<1x32x8xf32, #tpu.memory_space<vmem>>, vector<1x4x8xf32>
    %198 = vector.shape_cast %197 : vector<1x4x8xf32> to vector<4x8xf32>
    %199 = vector.shape_cast %196 : vector<4x8xf32> to vector<1x4x8xf32>
    tpu.vector_store %arg6[%c0_125, %c20, %c0_126], %199 {strides = array<i32>} : memref<1x32x8xf32, #tpu.memory_space<vmem>>, vector<1x4x8xf32>,
    %200 = vector.extract_strided_slice %1 {offsets = [0, 24], sizes = [8, 4], strides = [1, 1]} : vector<8x32xf32> to vector<8x4xf32>
    %c6 = arith.constant 6 : index
    %c0_127 = arith.constant 0 : index
    %c0_128 = arith.constant 0 : index
    %201 = vector.load %arg2[%c6, %c0_127, %c0_128] : memref<8x4x4xf32, #tpu.memory_space<vmem>>, vector<1x4x4xf32>
    %202 = vector.shape_cast %201 : vector<1x4x4xf32> to vector<4x4xf32>
    %cst_129 = arith.constant dense<0.000000e+00> : vector<8x4xf32>
    %203 = tpu.matmul %200, %202, %cst_129 {dimension_numbers = #tpu.dot_dimension_numbers<[1], [1], [0], [0], [0, 0, 1, 0], [], []>} : vector<8x4xf32>, vector<4x4xf32>, vector<8x4xf32> -> vector<8x4xf32>
    %c6_130 = arith.constant 6 : index
    %c0_131 = arith.constant 0 : index
    %c0_132 = arith.constant 0 : index
    %204 = vector.load %arg3[%c6_130, %c0_131, %c0_132] : memref<8x4x4xf32, #tpu.memory_space<vmem>>, vector<1x4x4xf32>
    %205 = vector.shape_cast %204 : vector<1x4x4xf32> to vector<4x4xf32>
    %cst_133 = arith.constant dense<0.000000e+00> : vector<4x8xf32>
    %206 = tpu.matmul %205, %200, %cst_133 {dimension_numbers = #tpu.dot_dimension_numbers<[1], [1], [0], [0], [0, 0, 1, 0], [], []>} : vector<4x4xf32>, vector<8x4xf32>, vector<4x8xf32> -> vector<4x8xf32>
    %c6_134 = arith.constant 6 : index
    %c0_135 = arith.constant 0 : index
    %c0_136 = arith.constant 0 : index
    %207 = vector.load %arg4[%c6_134, %c0_135, %c0_136] : memref<8x4x4xf32, #tpu.memory_space<vmem>>, vector<1x4x4xf32>
    %208 = vector.shape_cast %207 : vector<1x4x4xf32> to vector<4x4xf32>
    %cst_137 = arith.constant dense<0.000000e+00> : vector<4x8xf32>
    %209 = tpu.matmul %208, %200, %cst_137 {dimension_numbers = #tpu.dot_dimension_numbers<[1], [1], [0], [0], [0, 0, 1, 0], [], []>} : vector<4x4xf32>, vector<8x4xf32>, vector<4x8xf32> -> vector<4x8xf32>
    %cst_138 = arith.constant 0.420448214 : f32
    %210 = vector.broadcast %cst_138 : f32 to vector<8x4xf32>
    %211 = arith.mulf %203, %210 : vector<8x4xf32>
    %cst_139 = arith.constant 0.420448214 : f32
    %212 = vector.broadcast %cst_139 : f32 to vector<4x8xf32>
    %213 = arith.mulf %206, %212 : vector<4x8xf32>
    %214 = arith.addf %213, %4 : vector<4x8xf32>
    %cst_140 = arith.constant dense<0.000000e+00> : vector<8x8xf32>
    %215 = tpu.matmul %211, %214, %cst_140 {dimension_numbers = #tpu.dot_dimension_numbers<[1], [0], [0], [1], [0, 0, 1, 1], [], []>} : vector<8x4xf32>, vector<4x8xf32>, vector<8x8xf32> -> vector<8x8xf32>
    %cst_141 = arith.constant -1.000000e+09 : f32
    %216 = vector.broadcast %cst_141 : f32 to vector<8x8xf32>
    %217 = arith.select %7, %216, %215 : vector<8x8xi1>, vector<8x8xf32>
    %cst_142 = arith.constant dense<0xFF800000> : vector<8xf32>
    %218 = vector.multi_reduction <maximumf>, %217, %cst_142 [1] : vector<8x8xf32> to vector<8xf32>
    %219 = vector.shape_cast %218 : vector<8xf32> to vector<8x1xf32>
    %220 = vector.broadcast %219 : vector<8x1xf32> to vector<8x8xf32>
    %221 = arith.subf %217, %220 : vector<8x8xf32>
    %222 = math.exp %221 : vector<8x8xf32>
    %cst_143 = arith.constant dense<0.000000e+00> : vector<8xf32>
    %223 = vector.multi_reduction <add>, %222, %cst_143 [1] : vector<8x8xf32> to vector<8xf32>
    %224 = vector.shape_cast %223 : vector<8xf32> to vector<8x1xf32>
    %225 = tpu.reciprocal %224 {approx = true} : vector<8x1xf32> -> vector<8x1xf32>
    %226 = vector.broadcast %225 : vector<8x1xf32> to vector<8x8xf32>
    %227 = arith.mulf %222, %226 : vector<8x8xf32>
    %cst_144 = arith.constant dense<0.000000e+00> : vector<4x8xf32>
    %228 = tpu.matmul %209, %227, %cst_144 {dimension_numbers = #tpu.dot_dimension_numbers<[1], [1], [0], [0], [0, 0, 1, 0], [], []>} : vector<4x8xf32>, vector<8x8xf32>, vector<4x8xf32> -> vector<4x8xf32>
    %c0_145 = arith.constant 0 : index
    %c24 = arith.constant 24 : index
    %c0_146 = arith.constant 0 : index
    %229 = vector.load %arg6[%c0_145, %c24, %c0_146] : memref<1x32x8xf32, #tpu.memory_space<vmem>>, vector<1x4x8xf32>
    %230 = vector.shape_cast %229 : vector<1x4x8xf32> to vector<4x8xf32>
    %231 = vector.shape_cast %228 : vector<4x8xf32> to vector<1x4x8xf32>
    tpu.vector_store %arg6[%c0_145, %c24, %c0_146], %231 {strides = array<i32>} : memref<1x32x8xf32, #tpu.memory_space<vmem>>, vector<1x4x8xf32>,
    %232 = vector.extract_strided_slice %1 {offsets = [0, 28], sizes = [8, 4], strides = [1, 1]} : vector<8x32xf32> to vector<8x4xf32>
    %c7 = arith.constant 7 : index
    %c0_147 = arith.constant 0 : index
    %c0_148 = arith.constant 0 : index
    %233 = vector.load %arg2[%c7, %c0_147, %c0_148] : memref<8x4x4xf32, #tpu.memory_space<vmem>>, vector<1x4x4xf32>
    %234 = vector.shape_cast %233 : vector<1x4x4xf32> to vector<4x4xf32>
    %cst_149 = arith.constant dense<0.000000e+00> : vector<8x4xf32>
    %235 = tpu.matmul %232, %234, %cst_149 {dimension_numbers = #tpu.dot_dimension_numbers<[1], [1], [0], [0], [0, 0, 1, 0], [], []>} : vector<8x4xf32>, vector<4x4xf32>, vector<8x4xf32> -> vector<8x4xf32>
    %c7_150 = arith.constant 7 : index
    %c0_151 = arith.constant 0 : index
    %c0_152 = arith.constant 0 : index
    %236 = vector.load %arg3[%c7_150, %c0_151, %c0_152] : memref<8x4x4xf32, #tpu.memory_space<vmem>>, vector<1x4x4xf32>
    %237 = vector.shape_cast %236 : vector<1x4x4xf32> to vector<4x4xf32>
    %cst_153 = arith.constant dense<0.000000e+00> : vector<4x8xf32>
    %238 = tpu.matmul %237, %232, %cst_153 {dimension_numbers = #tpu.dot_dimension_numbers<[1], [1], [0], [0], [0, 0, 1, 0], [], []>} : vector<4x4xf32>, vector<8x4xf32>, vector<4x8xf32> -> vector<4x8xf32>
    %c7_154 = arith.constant 7 : index
    %c0_155 = arith.constant 0 : index
    %c0_156 = arith.constant 0 : index
    %239 = vector.load %arg4[%c7_154, %c0_155, %c0_156] : memref<8x4x4xf32, #tpu.memory_space<vmem>>, vector<1x4x4xf32>
    %240 = vector.shape_cast %239 : vector<1x4x4xf32> to vector<4x4xf32>
    %cst_157 = arith.constant dense<0.000000e+00> : vector<4x8xf32>
    %241 = tpu.matmul %240, %232, %cst_157 {dimension_numbers = #tpu.dot_dimension_numbers<[1], [1], [0], [0], [0, 0, 1, 0], [], []>} : vector<4x4xf32>, vector<8x4xf32>, vector<4x8xf32> -> vector<4x8xf32>
    %cst_158 = arith.constant 0.420448214 : f32
    %242 = vector.broadcast %cst_158 : f32 to vector<8x4xf32>
    %243 = arith.mulf %235, %242 : vector<8x4xf32>
    %cst_159 = arith.constant 0.420448214 : f32
    %244 = vector.broadcast %cst_159 : f32 to vector<4x8xf32>
    %245 = arith.mulf %238, %244 : vector<4x8xf32>
    %246 = arith.addf %245, %4 : vector<4x8xf32>
    %cst_160 = arith.constant dense<0.000000e+00> : vector<8x8xf32>
    %247 = tpu.matmul %243, %246, %cst_160 {dimension_numbers = #tpu.dot_dimension_numbers<[1], [0], [0], [1], [0, 0, 1, 1], [], []>} : vector<8x4xf32>, vector<4x8xf32>, vector<8x8xf32> -> vector<8x8xf32>
    %cst_161 = arith.constant -1.000000e+09 : f32
    %248 = vector.broadcast %cst_161 : f32 to vector<8x8xf32>
    %249 = arith.select %7, %248, %247 : vector<8x8xi1>, vector<8x8xf32>
    %cst_162 = arith.constant dense<0xFF800000> : vector<8xf32>
    %250 = vector.multi_reduction <maximumf>, %249, %cst_162 [1] : vector<8x8xf32> to vector<8xf32>
    %251 = vector.shape_cast %250 : vector<8xf32> to vector<8x1xf32>
    %252 = vector.broadcast %251 : vector<8x1xf32> to vector<8x8xf32>
    %253 = arith.subf %249, %252 : vector<8x8xf32>
    %254 = math.exp %253 : vector<8x8xf32>
    %cst_163 = arith.constant dense<0.000000e+00> : vector<8xf32>
    %255 = vector.multi_reduction <add>, %254, %cst_163 [1] : vector<8x8xf32> to vector<8xf32>
    %256 = vector.shape_cast %255 : vector<8xf32> to vector<8x1xf32>
    %257 = tpu.reciprocal %256 {approx = true} : vector<8x1xf32> -> vector<8x1xf32>
    %258 = vector.broadcast %257 : vector<8x1xf32> to vector<8x8xf32>
    %259 = arith.mulf %254, %258 : vector<8x8xf32>
    %cst_164 = arith.constant dense<0.000000e+00> : vector<4x8xf32>
    %260 = tpu.matmul %241, %259, %cst_164 {dimension_numbers = #tpu.dot_dimension_numbers<[1], [1], [0], [0], [0, 0, 1, 0], [], []>} : vector<4x8xf32>, vector<8x8xf32>, vector<4x8xf32> -> vector<4x8xf32>
    %c0_165 = arith.constant 0 : index
    %c28 = arith.constant 28 : index
    %c0_166 = arith.constant 0 : index
    %261 = vector.load %arg6[%c0_165, %c28, %c0_166] : memref<1x32x8xf32, #tpu.memory_space<vmem>>, vector<1x4x8xf32>
    %262 = vector.shape_cast %261 : vector<1x4x8xf32> to vector<4x8xf32>
    %263 = vector.shape_cast %260 : vector<4x8xf32> to vector<1x4x8xf32>
    tpu.vector_store %arg6[%c0_165, %c28, %c0_166], %263 {strides = array<i32>} : memref<1x32x8xf32, #tpu.memory_space<vmem>>, vector<1x4x8xf32>,
    return
  }
  func.func @transform_0(%arg0: i32) -> (i32, i32, i32) {
    %c0_i32 = arith.constant 0 : i32
    %c0_i32_0 = arith.constant 0 : i32
    %c0_i32_1 = arith.constant 0 : i32
    return %arg0, %c0_i32, %c0_i32_0 : i32, i32, i32
  }
  func.func @transform_1(%arg0: i32) -> (i32, i32, i32) {
    %c0_i32 = arith.constant 0 : i32
    %c0_i32_0 = arith.constant 0 : i32
    %c0_i32_1 = arith.constant 0 : i32
    %c0_i32_2 = arith.constant 0 : i32
    return %c0_i32, %c0_i32_0, %c0_i32_1 : i32, i32, i32
  }
  func.func @transform_2(%arg0: i32) -> (i32, i32, i32) {
    %c0_i32 = arith.constant 0 : i32
    %c0_i32_0 = arith.constant 0 : i32
    %c0_i32_1 = arith.constant 0 : i32
    %c0_i32_2 = arith.constant 0 : i32
    return %c0_i32, %c0_i32_0, %c0_i32_1 : i32, i32, i32
  }
  func.func @transform_3(%arg0: i32) -> (i32, i32, i32) {
    %c0_i32 = arith.constant 0 : i32
    %c0_i32_0 = arith.constant 0 : i32
    %c0_i32_1 = arith.constant 0 : i32
    %c0_i32_2 = arith.constant 0 : i32
    return %c0_i32, %c0_i32_0, %c0_i32_1 : i32, i32, i32
  }
  func.func @transform_4(%arg0: i32) -> (i32, i32) {
    %c0_i32 = arith.constant 0 : i32
    %c0_i32_0 = arith.constant 0 : i32
    %c0_i32_1 = arith.constant 0 : i32
    return %c0_i32, %c0_i32_0 : i32, i32
  }
  func.func @transform_5(%arg0: i32) -> (i32, i32, i32) {
    %c0_i32 = arith.constant 0 : i32
    %c0_i32_0 = arith.constant 0 : i32
    %c0_i32_1 = arith.constant 0 : i32
    return %arg0, %c0_i32, %c0_i32_0 : i32, i32, i32
  }
}

</mosaic_0001>

<bundles_post_ra>
// kernel: tpu_custom_call.1
= control target key start
LH: loop header
LB: loop body
LE: loop exit
PB: predicated region body
PF: predicated region fallthrough
CT: control target
= control target key end

     0   :  { %s1665_s18 = smov 0   ;;  %s1917_s0 = inlined_call_operand.vmem [shape: f32[2,8,32], index: 0, kind: input, shape index: {}]   ;;  %s1918_s1 = inlined_call_operand.vmem [shape: f32[8,4,4], index: 1, kind: input, shape index: {}]   ;;  %s1919_s2 = inlined_call_operand.vmem [shape: f32[8,4,4], index: 2, kind: input, shape index: {}]   ;;  %s1920_s3 = inlined_call_operand.vmem [shape: f32[8,4,4], index: 3, kind: input, shape index: {}]   ;;  %s1921_s4 = inlined_call_operand.vmem [shape: f32[4,8], index: 4, kind: input, shape index: {}]   ;;  %s1922_s5 = inlined_call_operand.vmem [shape: f32[2,32,8], index: 5, kind: output, shape index: {}]  }
   0x1 LB: > { %s1461_s19 = sadd.s32 4294967295, %s1626_s18   ;;  %p1465_p0 = scmp.ge.s32.totalorder %s1626_s18, 1  ;;  %s1626_s18 = sphi %s1665_s18, %s15_s18  }
   0x2   : > { %p186_p1 = scmp.lt.s32.totalorder %s1626_s18, 3 }
   0x4   : > { %p187_p2 = pnand %p1465_p0, %p186_p1 }
   0x5   : > { %p213_p3 = scmp.lt.s32.totalorder (!%p187_p2), %s1461_s19, 1  ;;  %s1628_s28 = smov (!%p187_p2), 124  }
   0x6   : > { %190 = sbr.rel (%p187_p2) target bundleno = 3434 (0xd6a), region = 40  ;;  %s1629_s12 = smov (!%p187_p2), 120  }
   0x7   : > { %s1630_s24 = smov (!%p187_p2), 116   ;;  %s1631_s6 = smov (!%p187_p2), 112  }
   0x8   : > { %s1634_s29 = smov (!%p187_p2), 100  }
   0xb   : > { %vm231_vm0 = vcmask 31744   ;;  %v230_v0 = vld [vmem:[%s1918_s1] sm:$0xf]  ;;  %s1926_s19 = smov (!%p213_p3, %s1461_s19), 1  ;;  %vm312_vm1 = vcmask 1043456   ;;  %v225_v12 = vlaneseq  ;;  %vm337_vm3 = vcmask 64512  }
   0xc   : > { %1469 = vmatpush.xpose.msk.msra.mxu0 %vm231_vm0, %v230_v0  ;;  %s1466_s22 = sshll.u32 %s1926_s19, 3  ;;  %v258_v2 = vld [vmem:[%s1919_s2] sm:$0xf]  ;;  %v1479_v10 = vld [vmem:[%s1918_s1 + $0x4] sm:$0xf]  ;;  %s1572_s13 = sshll.u32 %s1926_s19, 5 }
   0xd   : > { %s216_s25 = scalar_lea.vmem %s1917_s0, %s1466_s22  ;;  %v223_v3 = vld [vmem:[%s1921_s4] sm:$0xf]  ;;  %v226_v13 = vshrl.u32 %v225_v12, 7  ;;  %v228_v14 = vand.u32 127, %v225_v12  ;;  %v1482_v20 = vld [vmem:[%s1919_s2 + $0x4] sm:$0xf]  ;;  %s1737_s16 = scalar_lea.vmem %s1922_s5, %s1572_s13 }
   0xe   : > { %v1683_v1 = vld [vmem:[%s216_s25] sm:$0xff]  ;;  %v1699_v5 = vmul.f32 2.3784142, %v223_v3  ;;  %vm375_vm4 = vcmask 60416   ;;  %v1492_v40 = vld [vmem:[%s1918_s1 + $0x8] sm:$0xf] }
   0xf   : > { %1471 = vmatpush.xpose.msk.msra.mxu1 %vm231_vm0, %v1683_v1  ;;  %1470 = vmatmul.msk.f32.vlgmr.msra.gmra.mxu0 %vm231_vm0, %v1683_v1  ;;  %vm1711_vm2 = vcmp.gt.s32.totalorder %v228_v14, %v226_v13  ;;  %v282_v19 = vld [vmem:[%s1920_s3] sm:$0xf]  ;;  %v1485_v39 = vld [vmem:[%s1920_s3 + $0x4] sm:$0xf]  ;;  %v1495_v42 = vld [vmem:[%s1919_s2 + $0x8] sm:$0xf] }
  0x10   : > { %1473 = vmatpush.xpose.msk.msra.mxu2 %vm231_vm0, %v1683_v1  ;;  %379 = vrot.lane.b32.xlu0 %v1683_v1, %s1628_s28  ;;  %v1498_v61 = vld [vmem:[%s1920_s3 + $0x8] sm:$0xf]  ;;  %v1505_v62 = vld [vmem:[%s1918_s1 + $0xc] sm:$0xf]  ;;  %s1632_s13 = smov 108   ;;  %s1633_s22 = smov 104  }
  0x11   : > { %1480 = vmatpush.xpose.msk.msrb.mxu0 %vm231_vm0, %v1479_v10  ;;  %v1508_v0 = vld [vmem:[%s1919_s2 + $0xc] sm:$0xf] }
  0x12   : > { %1472 = vmatmul.msk.f32.vlgmr.msra.gmra.mxu1 %vm231_vm0, %v258_v2 }
  0x13   : > { %1474 = vmatmul.msk.f32.vlgmr.msra.gmra.mxu2 %vm231_vm0, %v282_v19 }
  0x82   : > { %v380_v11 = vpop.permute.xlu0 %379 }
  0x83   : > { %1483 = vmatpush.xpose.msk.msrb.mxu1 %vm231_vm0, %v380_v11  ;;  %1486 = vmatpush.xpose.msk.msrb.mxu2 %vm231_vm0, %v380_v11 }
  0x84   : > { %1481 = vmatmul.msk.f32.vlgmr.msrb.gmra.mxu0 %vm231_vm0, %v380_v11 }
  0x86   : > { %1484 = vmatmul.msk.f32.vlgmr.msrb.gmra.mxu1 %vm231_vm0, %v1482_v20  ;;  %1487 = vmatmul.msk.f32.vlgmr.msrb.gmra.mxu2 %vm231_vm0, %v1485_v39 }
  0x87   : > { %1493 = vmatpush.xpose.msk.msra.mxu1 %vm231_vm0, %v1492_v40 }
  0x8c   : > { %v255_v4 = vpop.f32.mrf.mxu0 }
  0x8d   : > { %v306_v8 = vmul.f32 0.4204482, %v255_v4 }
  0x8f   : > { %v279_v6 = vpop.f32.mrf.mxu1 }
  0x90   : > { %v307_v7 = vmul.f32 0.4204482, %v279_v6 }
  0x92   : > { %v308_v9 = vadd.f32 %v307_v7, %v1699_v5 }
  0x94   : > { %1475 = vmatpush.msk.msra.mxu3 %vm312_vm1, %v308_v9 }
  0x95   : > { %1476 = vmatmul.msk.f32.vlgmr.msra.gmra.mxu3 %vm231_vm0, %v306_v8 }
  0x96   : > { %v303_v32 = vpop.f32.mrf.mxu2 }
 0x101   : > { %v403_v33 = vpop.f32.mrf.mxu0 }
 0x102   : > { %v456_v34 = vmul.f32 0.4204482, %v403_v33 }
 0x103   : > { %v428_v27 = vpop.f32.mrf.mxu1 }
 0x104   : > { %v457_v28 = vmul.f32 0.4204482, %v428_v27 }
 0x106   : > { %v458_v30 = vadd.f32 %v457_v28, %v1699_v5 }
 0x109   : > { %v453_v48 = vpop.f32.mrf.mxu2 }
 0x118   : > { %v333_v16 = vpop.f32.mrf.mxu3 }
 0x119   : > { %v336_v17 = vsel %vm1711_vm2, -1e+09, %v333_v16 }
 0x11a   : > { %v338_v18 = vsel %vm337_vm3, %v336_v17, -inf }
 0x11b   : > { %339 = vmax.xlane.f32.xlu0 %v338_v18  ;;  %v1518_v18 = vld [vmem:[%s1918_s1 + $0x10] sm:$0xf] }
 0x12f   : > { %820 = vrot.lane.b32.xlu0 %v1683_v1, %s1631_s6 }
 0x18e   : > { %v340_v21 = vpop.xlane.xlu0 %339 }
 0x18f   : > { %v341_v22 = vsub.f32 %v336_v17, %v340_v21 }
 0x191   : > { %v342_v23 = vmul.f32 1.442695, %v341_v22 }
 0x193   : > { %1588 = vpow2.f32 %v342_v23 }
 0x199   : > { %v1589_v24 = vpop.eup %1588 }
 0x19a   : > { %v344_v25 = vsel %vm337_vm3, %v1589_v24, 0.0 }
 0x19b   : > { %345 = vadd.xlane.f32.xlu1 %v344_v25  ;;  %v1521_v25 = vld [vmem:[%s1919_s2 + $0x10] sm:$0xf] }
 0x1a1   : > { %v821_v19 = vpop.permute.xlu0 %820 }
 0x1b4   : > { %526 = vrot.lane.b32.xlu1 %v1683_v1, %s1629_s12 }
 0x20e   : > { %v346_v26 = vpop.xlane.xlu1 %345 }
 0x20f   : > { %1590 = vrcp.f32 %v346_v26 }
 0x215   : > { %v1591_v29 = vpop.eup %1590 }
 0x216   : > { %v348_v31 = vmul.f32 %v1591_v29, %v1589_v24  ;;  %v1511_v24 = vld [vmem:[%s1920_s3 + $0xc] sm:$0xf] }
 0x218   : > { %1477 = vmatpush.xpose.msk.msrb.mxu3 %vm337_vm3, %v348_v31 }
 0x21b   : > { %1478 = vmatmul.msk.f32.vlgmr.msrb.gmra.mxu3 %vm337_vm3, %v303_v32 }
 0x21c   : > { %1488 = vmatpush.msk.msra.mxu3 %vm312_vm1, %v458_v30 }
 0x223   : > { %1489 = vmatmul.msk.f32.vlgmr.msra.gmra.mxu3 %vm231_vm0, %v456_v34 }
 0x226   : > { %v527_v41 = vpop.permute.xlu1 %526 }
 0x227   : > { %1496 = vmatpush.xpose.msk.msra.mxu2 %vm231_vm0, %v527_v41  ;;  %1499 = vmatpush.xpose.msk.msrb.mxu3 %vm231_vm0, %v527_v41 }
 0x228   : > { %1494 = vmatmul.msk.f32.vlgmr.msra.gmra.mxu1 %vm231_vm0, %v527_v41 }
 0x22a   : > { %1497 = vmatmul.msk.f32.vlgmr.msra.gmra.mxu2 %vm231_vm0, %v1495_v42 }
 0x22b   : > { %1500 = vmatmul.msk.f32.vlgmr.msrb.gmra.mxu3 %vm231_vm0, %v1498_v61  ;;  %1506 = vmatpush.xpose.msk.msrb.mxu2 %vm231_vm0, %v1505_v62 }
 0x29e   : > { %v372_v35 = vpop.f32.mrf.mxu3 }
 0x29f   : > { %376 = vst.msk [vmem:[%s1737_s16] sm:$0xf] %vm375_vm4, %v372_v35 }
 0x2a5   : > { %v550_v55 = vpop.f32.mrf.mxu1 }
 0x2a6   : > { %v482_v36 = vpop.f32.mrf.mxu3  ;;  %v603_v56 = vmul.f32 0.4204482, %v550_v55 }
 0x2a7   : > { %v485_v37 = vsel %vm1711_vm2, -1e+09, %v482_v36 }
 0x2a8   : > { %v486_v38 = vsel %vm337_vm3, %v485_v37, -inf }
 0x2a9   : > { %487 = vmax.xlane.f32.xlu2 %v486_v38 }
 0x2ad   : > { %v575_v50 = vpop.f32.mrf.mxu2 }
 0x2ae   : > { %v604_v51 = vmul.f32 0.4204482, %v575_v50  ;;  %v600_v8 = vpop.f32.mrf.mxu3 }
 0x2b0   : > { %v605_v53 = vadd.f32 %v604_v51, %v1699_v5 }
 0x31c   : > { %v488_v43 = vpop.xlane.xlu2 %487 }
 0x31d   : > { %v489_v44 = vsub.f32 %v485_v37, %v488_v43 }
 0x31f   : > { %v490_v45 = vmul.f32 1.442695, %v489_v44  ;;  %v1524_v44 = vld [vmem:[%s1920_s3 + $0x10] sm:$0xf] }
 0x321   : > { %1592 = vpow2.f32 %v490_v45  ;;  %v1531_v45 = vld [vmem:[%s1918_s1 + $0x14] sm:$0xf] }
 0x327   : > { %v1593_v46 = vpop.eup %1592 }
 0x328   : > { %v492_v47 = vsel %vm337_vm3, %v1593_v46, 0.0 }
 0x329   : > { %493 = vadd.xlane.f32.xlu2 %v492_v47  ;;  %v1534_v47 = vld [vmem:[%s1919_s2 + $0x14] sm:$0xf] }
 0x341   : > { %673 = vrot.lane.b32.xlu2 %v1683_v1, %s1630_s24 }
 0x39c   : > { %v494_v49 = vpop.xlane.xlu2 %493 }
 0x39d   : > { %1594 = vrcp.f32 %v494_v49 }
 0x3a3   : > { %v1595_v52 = vpop.eup %1594 }
 0x3a4   : > { %v496_v54 = vmul.f32 %v1595_v52, %v1593_v46  ;;  %v674_v63 = vpop.permute.xlu2 %673 }
 0x3a5   : > { %1509 = vmatpush.xpose.msk.msra.mxu3 %vm231_vm0, %v674_v63  ;;  %1507 = vmatmul.msk.f32.vlgmr.msrb.gmra.mxu2 %vm231_vm0, %v674_v63 }
 0x3a6   : > { %1490 = vmatpush.xpose.msk.msra.mxu0 %vm337_vm3, %v496_v54 }
 0x3a8   : > { %1510 = vmatmul.msk.f32.vlgmr.msra.gmra.mxu3 %vm231_vm0, %v1508_v0 }
 0x3a9   : > { %1491 = vmatmul.msk.f32.vlgmr.msra.gmra.mxu0 %vm337_vm3, %v453_v48  ;;  %1519 = vmatpush.xpose.msk.msrb.mxu3 %vm231_vm0, %v1518_v18 }
 0x3aa   : > { %1501 = vmatpush.msk.msrb.mxu0 %vm312_vm1, %v605_v53 }
 0x3ac   : > { %1512 = vmatpush.xpose.msk.msra.mxu0 %vm231_vm0, %v674_v63 }
 0x3b0   : > { %1520 = vmatmul.msk.f32.vlgmr.msrb.gmra.mxu3 %vm231_vm0, %v821_v19 }
 0x3b1   : > { %1502 = vmatmul.msk.f32.vlgmr.msrb.gmra.mxu0 %vm231_vm0, %v603_v56 }
 0x3b2   : > { %1522 = vmatpush.xpose.msk.msrb.mxu0 %vm231_vm0, %v821_v19 }
 0x3b9   : > { %1513 = vmatmul.msk.f32.vlgmr.msra.gmra.mxu0 %vm231_vm0, %v1511_v24 }
 0x3ba   : > { %1532 = vmatpush.xpose.msk.msra.mxu0 %vm231_vm0, %v1531_v45 }
 0x3c1   : > { %1523 = vmatmul.msk.f32.vlgmr.msrb.gmra.mxu0 %vm231_vm0, %v1521_v25 }
 0x426   : > { %v520_v57 = vpop.f32.mrf.mxu0 }
 0x427   : > { %523 = vst.msk [vmem:[%s1737_s16 + $0x4] sm:$0xf] %vm375_vm4, %v520_v57 }
 0x428   : > { %v697_v16 = vpop.f32.mrf.mxu2 }
 0x429   : > { %v750_v17 = vmul.f32 0.4204482, %v697_v16 }
 0x42b   : > { %v722_v10 = vpop.f32.mrf.mxu3 }
 0x42c   : > { %v751_v11 = vmul.f32 0.4204482, %v722_v10 }
 0x42e   : > { %v629_v58 = vpop.f32.mrf.mxu0  ;;  %v752_v13 = vadd.f32 %v751_v11, %v1699_v5 }
 0x42f   : > { %v632_v59 = vsel %vm1711_vm2, -1e+09, %v629_v58 }
 0x430   : > { %v633_v60 = vsel %vm337_vm3, %v632_v59, -inf }
 0x431   : > { %634 = vmax.xlane.f32.xlu1 %v633_v60 }
 0x433   : > { %v844_v38 = vpop.f32.mrf.mxu3 }
 0x434   : > { %v897_v39 = vmul.f32 0.4204482, %v844_v38 }
 0x436   : > { %v747_v31 = vpop.f32.mrf.mxu0 }
 0x43e   : > { %v869_v33 = vpop.f32.mrf.mxu0 }
 0x43f   : > { %v898_v34 = vmul.f32 0.4204482, %v869_v33 }
 0x441   : > { %v899_v36 = vadd.f32 %v898_v34, %v1699_v5 }
 0x4a4   : > { %v635_v2 = vpop.xlane.xlu1 %634 }
 0x4a5   : > { %v636_v3 = vsub.f32 %v632_v59, %v635_v2 }
 0x4a7   : > { %v637_v4 = vmul.f32 1.442695, %v636_v3  ;;  %v1537_v3 = vld [vmem:[%s1920_s3 + $0x14] sm:$0xf] }
 0x4a9   : > { %1596 = vpow2.f32 %v637_v4  ;;  %v1544_v4 = vld [vmem:[%s1918_s1 + $0x18] sm:$0xf] }
 0x4af   : > { %v1597_v6 = vpop.eup %1596 }
 0x4b0   : > { %v639_v7 = vsel %vm337_vm3, %v1597_v6, 0.0 }
 0x4b1   : > { %640 = vadd.xlane.f32.xlu2 %v639_v7  ;;  %v1547_v7 = vld [vmem:[%s1919_s2 + $0x18] sm:$0xf] }
 0x4c9   : > { %967 = vrot.lane.b32.xlu2 %v1683_v1, %s1632_s13 }
 0x524   : > { %v641_v9 = vpop.xlane.xlu2 %640 }
 0x525   : > { %1598 = vrcp.f32 %v641_v9 }
 0x52b   : > { %v1599_v12 = vpop.eup %1598 }
 0x52c   : > { %v643_v14 = vmul.f32 %v1599_v12, %v1597_v6  ;;  %v968_v46 = vpop.permute.xlu2 %967 }
 0x52d   : > { %1533 = vmatmul.msk.f32.vlgmr.msra.gmra.mxu0 %vm231_vm0, %v968_v46 }
 0x52e   : > { %1503 = vmatpush.xpose.msk.msrb.mxu1 %vm337_vm3, %v643_v14 }
 0x531   : > { %1504 = vmatmul.msk.f32.vlgmr.msrb.gmra.mxu1 %vm337_vm3, %v600_v8 }
 0x532   : > { %1514 = vmatpush.msk.msra.mxu1 %vm312_vm1, %v752_v13 }
 0x534   : > { %1525 = vmatpush.xpose.msk.msrb.mxu1 %vm231_vm0, %v821_v19 }
 0x539   : > { %1515 = vmatmul.msk.f32.vlgmr.msra.gmra.mxu1 %vm231_vm0, %v750_v17 }
 0x53a   : > { %1535 = vmatpush.xpose.msk.msra.mxu1 %vm231_vm0, %v968_v46 }
 0x541   : > { %1526 = vmatmul.msk.f32.vlgmr.msrb.gmra.mxu1 %vm231_vm0, %v1524_v44 }
 0x542   : > { %1545 = vmatpush.xpose.msk.msrb.mxu1 %vm231_vm0, %v1544_v4 }
 0x549   : > { %1536 = vmatmul.msk.f32.vlgmr.msra.gmra.mxu1 %vm231_vm0, %v1534_v47  ;;  %v1563_v47 = vld [vmem:[%s1920_s3 + $0x1c] sm:$0xf] }
 0x5aa   : > { %v991_v60 = vpop.f32.mrf.mxu0 }
 0x5ab   : > { %v1044_v61 = vmul.f32 0.4204482, %v991_v60 }
 0x5ae   : > { %v667_v20 = vpop.f32.mrf.mxu1 }
 0x5af   : > { %670 = vst.msk [vmem:[%s1737_s16 + $0x8] sm:$0xf] %vm375_vm4, %v667_v20 }
 0x5b6   : > { %v776_v21 = vpop.f32.mrf.mxu1 }
 0x5b7   : > { %v779_v22 = vsel %vm1711_vm2, -1e+09, %v776_v21 }
 0x5b8   : > { %v780_v23 = vsel %vm337_vm3, %v779_v22, -inf }
 0x5b9   : > { %781 = vmax.xlane.f32.xlu0 %v780_v23 }
 0x5be   : > { %v894_v53 = vpop.f32.mrf.mxu1 }
 0x5c6   : > { %v1016_v55 = vpop.f32.mrf.mxu1 }
 0x5c7   : > { %v1045_v56 = vmul.f32 0.4204482, %v1016_v55 }
 0x5c9   : > { %v1046_v58 = vadd.f32 %v1045_v56, %v1699_v5 }
 0x62c   : > { %v782_v26 = vpop.xlane.xlu0 %781 }
 0x62d   : > { %v783_v27 = vsub.f32 %v779_v22, %v782_v26 }
 0x62f   : > { %v784_v28 = vmul.f32 1.442695, %v783_v27  ;;  %v1550_v27 = vld [vmem:[%s1920_s3 + $0x18] sm:$0xf] }
 0x631   : > { %1600 = vpow2.f32 %v784_v28 }
 0x637   : > { %v1601_v29 = vpop.eup %1600 }
 0x638   : > { %v786_v30 = vsel %vm337_vm3, %v1601_v29, 0.0 }
 0x639   : > { %787 = vadd.xlane.f32.xlu1 %v786_v30 }
 0x6ac   : > { %v788_v32 = vpop.xlane.xlu1 %787 }
 0x6ad   : > { %1602 = vrcp.f32 %v788_v32 }
 0x6b3   : > { %v1603_v35 = vpop.eup %1602 }
 0x6b4   : > { %v790_v37 = vmul.f32 %v1603_v35, %v1601_v29  ;;  %v1560_v29 = vld [vmem:[%s1919_s2 + $0x1c] sm:$0xf] }
 0x6b6   : > { %1516 = vmatpush.xpose.msk.msra.mxu2 %vm337_vm3, %v790_v37 }
 0x6b9   : > { %1517 = vmatmul.msk.f32.vlgmr.msra.gmra.mxu2 %vm337_vm3, %v747_v31 }
 0x6ba   : > { %1527 = vmatpush.msk.msrb.mxu2 %vm312_vm1, %v899_v36 }
 0x6bc   : > { %1538 = vmatpush.xpose.msk.msra.mxu2 %vm231_vm0, %v968_v46 }
 0x6c1   : > { %1528 = vmatmul.msk.f32.vlgmr.msrb.gmra.mxu2 %vm231_vm0, %v897_v39 }
 0x6c9   : > { %1539 = vmatmul.msk.f32.vlgmr.msra.gmra.mxu2 %vm231_vm0, %v1537_v3 }
 0x73c   : > { %v814_v40 = vpop.f32.mrf.mxu2 }
 0x73d   : > { %817 = vst.msk [vmem:[%s1737_s16 + $0xc] sm:$0xf] %vm375_vm4, %v814_v40 }
 0x744   : > { %v923_v41 = vpop.f32.mrf.mxu2 }
 0x745   : > { %v926_v42 = vsel %vm1711_vm2, -1e+09, %v923_v41 }
 0x746   : > { %v927_v43 = vsel %vm337_vm3, %v926_v42, -inf }
 0x747   : > { %928 = vmax.xlane.f32.xlu1 %v927_v43 }
 0x74c   : > { %v1041_v13 = vpop.f32.mrf.mxu2 }
 0x7ba   : > { %v929_v48 = vpop.xlane.xlu1 %928 }
 0x7bb   : > { %v930_v49 = vsub.f32 %v926_v42, %v929_v48 }
 0x7bd   : > { %v931_v50 = vmul.f32 1.442695, %v930_v49 }
 0x7bf   : > { %1604 = vpow2.f32 %v931_v50 }
 0x7c5   : > { %v1605_v51 = vpop.eup %1604 }
 0x7c6   : > { %v933_v52 = vsel %vm337_vm3, %v1605_v51, 0.0 }
 0x7c7   : > { %934 = vadd.xlane.f32.xlu1 %v933_v52 }
 0x7e0   : > { %1114 = vrot.lane.b32.xlu1 %v1683_v1, %s1633_s22 }
 0x83a   : > { %v935_v54 = vpop.xlane.xlu1 %934 }
 0x83b   : > { %1606 = vrcp.f32 %v935_v54 }
 0x841   : > { %v1607_v57 = vpop.eup %1606 }
 0x842   : > { %v937_v59 = vmul.f32 %v1607_v57, %v1605_v51 }
 0x844   : > { %1529 = vmatpush.xpose.msk.msra.mxu3 %vm337_vm3, %v937_v59 }
 0x847   : > { %1530 = vmatmul.msk.f32.vlgmr.msra.gmra.mxu3 %vm337_vm3, %v894_v53 }
 0x848   : > { %1540 = vmatpush.msk.msrb.mxu3 %vm312_vm1, %v1046_v58 }
 0x84f   : > { %1541 = vmatmul.msk.f32.vlgmr.msrb.gmra.mxu3 %vm231_vm0, %v1044_v61 }
 0x852   : > { %v1115_v6 = vpop.permute.xlu1 %1114 }
 0x853   : > { %1548 = vmatpush.xpose.msk.msrb.mxu2 %vm231_vm0, %v1115_v6  ;;  %1551 = vmatpush.xpose.msk.msra.mxu3 %vm231_vm0, %v1115_v6 }
 0x854   : > { %1546 = vmatmul.msk.f32.vlgmr.msrb.gmra.mxu1 %vm231_vm0, %v1115_v6 }
 0x856   : > { %1549 = vmatmul.msk.f32.vlgmr.msrb.gmra.mxu2 %vm231_vm0, %v1547_v7 }
 0x857   : > { %1552 = vmatmul.msk.f32.vlgmr.msra.gmra.mxu3 %vm231_vm0, %v1550_v27 }
 0x8ca   : > { %v961_v62 = vpop.f32.mrf.mxu3 }
 0x8cb   : > { %964 = vst.msk [vmem:[%s1737_s16 + $0x10] sm:$0xf] %vm375_vm4, %v961_v62 }
 0x8d1   : > { %v1138_v21 = vpop.f32.mrf.mxu1 }
 0x8d2   : > { %v1070_v63 = vpop.f32.mrf.mxu3  ;;  %v1191_v22 = vmul.f32 0.4204482, %v1138_v21 }
 0x8d3   : > { %v1073_v0 = vsel %vm1711_vm2, -1e+09, %v1070_v63 }
 0x8d4   : > { %v1074_v2 = vsel %vm337_vm3, %v1073_v0, -inf }
 0x8d5   : > { %1075 = vmax.xlane.f32.xlu2 %v1074_v2 }
 0x8d9   : > { %v1163_v16 = vpop.f32.mrf.mxu2 }
 0x8da   : > { %v1192_v17 = vmul.f32 0.4204482, %v1163_v16  ;;  %v1188_v35 = vpop.f32.mrf.mxu3 }
 0x8dc   : > { %v1193_v19 = vadd.f32 %v1192_v17, %v1699_v5 }
 0x948   : > { %v1076_v8 = vpop.xlane.xlu2 %1075 }
 0x949   : > { %v1077_v9 = vsub.f32 %v1073_v0, %v1076_v8 }
 0x94b   : > { %v1078_v10 = vmul.f32 1.442695, %v1077_v9 }
 0x94d   : > { %1608 = vpow2.f32 %v1078_v10 }
 0x953   : > { %v1609_v11 = vpop.eup %1608 }
 0x954   : > { %v1080_v12 = vsel %vm337_vm3, %v1609_v11, 0.0 }
 0x955   : > { %1081 = vadd.xlane.f32.xlu0 %v1080_v12 }
 0x969   : > { %1261 = vrot.lane.b32.xlu0 %v1683_v1, %s1634_s29  ;;  %v1557_v1 = vld [vmem:[%s1918_s1 + $0x1c] sm:$0xf] }
 0x96a   : > { %1558 = vmatpush.xpose.msk.msra.mxu2 %vm231_vm0, %v1557_v1 }
 0x9c8   : > { %v1082_v14 = vpop.xlane.xlu0 %1081 }
 0x9c9   : > { %1610 = vrcp.f32 %v1082_v14 }
 0x9cf   : > { %v1611_v18 = vpop.eup %1610 }
 0x9d0   : > { %v1084_v20 = vmul.f32 %v1611_v18, %v1609_v11 }
 0x9d2   : > { %1542 = vmatpush.xpose.msk.msrb.mxu0 %vm337_vm3, %v1084_v20 }
 0x9d5   : > { %1543 = vmatmul.msk.f32.vlgmr.msrb.gmra.mxu0 %vm337_vm3, %v1041_v13 }
 0x9d6   : > { %1553 = vmatpush.msk.msra.mxu0 %vm312_vm1, %v1193_v19 }
 0x9db   : > { %v1262_v28 = vpop.permute.xlu0 %1261 }
 0x9dc   : > { %1561 = vmatpush.xpose.msk.msrb.mxu3 %vm231_vm0, %v1262_v28  ;;  %1564 = vmatpush.xpose.msk.msrb.mxu0 %vm231_vm0, %v1262_v28 }
 0x9dd   : > { %1554 = vmatmul.msk.f32.vlgmr.msra.gmra.mxu0 %vm231_vm0, %v1191_v22  ;;  %1559 = vmatmul.msk.f32.vlgmr.msra.gmra.mxu2 %vm231_vm0, %v1262_v28 }
 0x9df   : > { %1562 = vmatmul.msk.f32.vlgmr.msrb.gmra.mxu3 %vm231_vm0, %v1560_v29 }
 0x9e5   : > { %1565 = vmatmul.msk.f32.vlgmr.msrb.gmra.mxu0 %vm231_vm0, %v1563_v47 }
 0xa52   : > { %v1108_v23 = vpop.f32.mrf.mxu0 }
 0xa53   : > { %1111 = vst.msk [vmem:[%s1737_s16 + $0x14] sm:$0xf] %vm375_vm4, %v1108_v23 }
 0xa5a   : > { %v1217_v24 = vpop.f32.mrf.mxu0 }
 0xa5b   : > { %v1220_v25 = vsel %vm1711_vm2, -1e+09, %v1217_v24 }
 0xa5c   : > { %v1221_v26 = vsel %vm337_vm3, %v1220_v25, -inf }
 0xa5d   : > { %1222 = vmax.xlane.f32.xlu1 %v1221_v26 }
 0xa60   : > { %v1285_v42 = vpop.f32.mrf.mxu2 }
 0xa61   : > { %v1338_v43 = vmul.f32 0.4204482, %v1285_v42 }
 0xa62   : > { %v1310_v37 = vpop.f32.mrf.mxu3  ;;  %v1335_v55 = vpop.f32.mrf.mxu0 }
 0xa63   : > { %v1339_v38 = vmul.f32 0.4204482, %v1310_v37 }
 0xa65   : > { %v1340_v40 = vadd.f32 %v1339_v38, %v1699_v5 }
 0xad0   : > { %v1223_v30 = vpop.xlane.xlu1 %1222 }
 0xad1   : > { %v1224_v31 = vsub.f32 %v1220_v25, %v1223_v30 }
 0xad3   : > { %v1225_v32 = vmul.f32 1.442695, %v1224_v31 }
 0xad5   : > { %1612 = vpow2.f32 %v1225_v32 }
 0xadb   : > { %v1613_v33 = vpop.eup %1612 }
 0xadc   : > { %v1227_v34 = vsel %vm337_vm3, %v1613_v33, 0.0 }
 0xadd   : > { %1228 = vadd.xlane.f32.xlu0 %v1227_v34 }
 0xb50   : > { %v1229_v36 = vpop.xlane.xlu0 %1228 }
 0xb51   : > { %1614 = vrcp.f32 %v1229_v36 }
 0xb57   : > { %v1615_v39 = vpop.eup %1614 }
 0xb58   : > { %v1231_v41 = vmul.f32 %v1615_v39, %v1613_v33 }
 0xb5a   : > { %1555 = vmatpush.xpose.msk.msra.mxu1 %vm337_vm3, %v1231_v41 }
 0xb5d   : > { %1556 = vmatmul.msk.f32.vlgmr.msra.gmra.mxu1 %vm337_vm3, %v1188_v35 }
 0xb5e   : > { %1566 = vmatpush.msk.msrb.mxu1 %vm312_vm1, %v1340_v40 }
 0xb65   : > { %1567 = vmatmul.msk.f32.vlgmr.msrb.gmra.mxu1 %vm231_vm0, %v1338_v43 }
 0xbda   : > { %v1255_v44 = vpop.f32.mrf.mxu1 }
 0xbdb   : > { %1258 = vst.msk [vmem:[%s1737_s16 + $0x18] sm:$0xf] %vm375_vm4, %v1255_v44 }
 0xbe2   : > { %v1364_v45 = vpop.f32.mrf.mxu1 }
 0xbe3   : > { %v1367_v46 = vsel %vm1711_vm2, -1e+09, %v1364_v45 }
 0xbe4   : > { %v1368_v5 = vsel %vm337_vm3, %v1367_v46, -inf }
 0xbe5   : > { %1369 = vmax.xlane.f32.xlu2 %v1368_v5 }
 0xc58   : > { %v1370_v48 = vpop.xlane.xlu2 %1369 }
 0xc59   : > { %v1371_v49 = vsub.f32 %v1367_v46, %v1370_v48 }
 0xc5b   : > { %v1372_v50 = vmul.f32 1.442695, %v1371_v49 }
 0xc5d   : > { %1616 = vpow2.f32 %v1372_v50 }
 0xc63   : > { %v1617_v51 = vpop.eup %1616 }
 0xc64   : > { %v1374_v52 = vsel %vm337_vm3, %v1617_v51, 0.0 }
 0xc65   : > { %1375 = vadd.xlane.f32.xlu2 %v1374_v52 }
 0xcd8   : > { %v1376_v15 = vpop.xlane.xlu2 %1375 }
 0xcd9   : > { %1618 = vrcp.f32 %v1376_v15 }
 0xcdf   : > { %v1619_v53 = vpop.eup %1618 }
 0xce0   : > { %v1378_v54 = vmul.f32 %v1619_v53, %v1617_v51 }
 0xce2   : > { %1568 = vmatpush.xpose.msk.msrb.mxu2 %vm337_vm3, %v1378_v54 }
 0xce5   : > { %1569 = vmatmul.msk.f32.vlgmr.msrb.gmra.mxu2 %vm337_vm3, %v1335_v55 }
 0xd68   : > { %v1402_v56 = vpop.f32.mrf.mxu2 }
 0xd69   : > { %1405 = vst.msk [vmem:[%s1737_s16 + $0x1c] sm:$0xf] %vm375_vm4, %v1402_v56 }
 0xd6a PF: > { %s15_s18 = sadd.s32 1, %s1626_s18  }
 0xd6b   : > { %p12_p4 = scmp.ge.s32.totalorder %s15_s18, 4  }
 0xd6d   :  { %14 = sbr.rel (!%p12_p4) target bundleno = 1 (0x1), region = 91 }

</bundles_post_ra>
